<compile_context>
chip_gen: v5e
topology: v5e:2x2
jax: 0.10.0
libtpu: 0.0.40
codegen_flags: <defaults>
</compile_context>

<pallas_src>
import functools

import jax
import jax.numpy as jnp
from jax.experimental import pallas as pl
from jax.experimental.pallas import tpu as pltpu


_D_IN = 784
_H1, _H1_PAD = 196, 256
_H2, _H2_PAD = 50, 128
_D_OUT, _D_OUT_PAD = 10, 128
_NEG_BIG = -1e30  # bias for padded logit columns -> exp() underflows to exactly 0


def _round_up(x, m):
    return ((x + m - 1) // m) * m


def _mlp_kernel(x_ref, w1_ref, b1_ref, w2_ref, b2_ref, w3_ref, b3_ref, o_ref):
    # Cast happens in-register (VPU), hidden under the MXU; x arrives in its
    # native HBM dtype so the wrapper never rewrites the activation.
    x = x_ref[...].astype(jnp.bfloat16)                                 # (tile, 784)

    # fc1 + ReLU (f32 accumulate, bf16 activations for the next MXU pass)
    h1 = jnp.dot(x, w1_ref[...], preferred_element_type=jnp.float32) + b1_ref[...]
    h1 = jnp.maximum(h1, 0.0).astype(jnp.bfloat16)                      # (tile, 256)

    # fc2 + ReLU
    h2 = jnp.dot(h1, w2_ref[...], preferred_element_type=jnp.float32) + b2_ref[...]
    h2 = jnp.maximum(h2, 0.0).astype(jnp.bfloat16)                      # (tile, 128)

    # fc3 (padded logit columns carry a -1e30 bias -> exp == 0)
    logits = jnp.dot(h2, w3_ref[...], preferred_element_type=jnp.float32) + b3_ref[...]

    # numerically stable softmax over the lane-dense 128-wide slab (f32 math)
    m = jnp.max(logits, axis=-1, keepdims=True)
    e = jnp.exp(logits - m)
    denom = jnp.sum(e, axis=-1, keepdims=True)
    o_ref[...] = (e * pl.reciprocal(denom, approx=True)).astype(o_ref.dtype)


def prepare_params(params):
    """One-time prep: pad to lane-multiple shapes, cast weights to bf16.

    Call once and reuse the returned tuple across forward calls (do NOT call
    per-step; that was the old per-call pad/cast overhead)."""
    w1 = jnp.zeros((_D_IN, _H1_PAD), jnp.bfloat16)
    w1 = w1.at[:, :_H1].set(params["w1"].astype(jnp.bfloat16))
    b1 = jnp.zeros((1, _H1_PAD), jnp.float32).at[:, :_H1].set(params["b1"])

    w2 = jnp.zeros((_H1_PAD, _H2_PAD), jnp.bfloat16)
    w2 = w2.at[:_H1, :_H2].set(params["w2"].astype(jnp.bfloat16))
    b2 = jnp.zeros((1, _H2_PAD), jnp.float32).at[:, :_H2].set(params["b2"])

    w3 = jnp.zeros((_H2_PAD, _D_OUT_PAD), jnp.bfloat16)
    w3 = w3.at[:_H2, :_D_OUT].set(params["w3"].astype(jnp.bfloat16))
    b3 = jnp.full((1, _D_OUT_PAD), _NEG_BIG, jnp.float32)
    b3 = b3.at[:, :_D_OUT].set(params["b3"])

    return w1, b1, w2, b2, w3, b3


def net_forward(x, prepared, *, batch_tile=2048):
    """x: (B, 784) f32 (or bf16).  prepared: output of prepare_params()."""
    assert batch_tile % 8 == 0
    w1, b1, w2, b2, w3, b3 = prepared
    B, d_in = x.shape
    assert d_in == _D_IN

    # Pad at most 7 tail rows so the batch axis is sublane-aligned; ragged tiles
    # beyond that are handled by the cdiv grid + Pallas boundary masking.
    B8 = _round_up(B, 8)
    if B8 != B:
        x = jnp.pad(x, ((0, B8 - B), (0, 0)))

    tile = min(batch_tile, B8)
    # Megacore (v7x has 2 TensorCores): make sure the "parallel" batch axis has
    # at least 2 grid steps for non-trivial batches so a core never idles.
    if B8 // tile < 2 and B8 >= 256:
        tile = _round_up(pl.cdiv(B8, 2), 8)

    grid = (pl.cdiv(B8, tile),)
    full = lambda a: pl.BlockSpec(a.shape, lambda i: (0, 0))  # grid-invariant, resident

    flops = 2 * B8 * (_D_IN * _H1_PAD + _H1_PAD * _H2_PAD + _H2_PAD * _D_OUT_PAD)
    transcendentals = B8 * (_D_OUT_PAD + 1)                    # exp + reciprocal
    bytes_accessed = (
        x.size * x.dtype.itemsize
        + (w1.size + w2.size + w3.size) * 2
        + (b1.size + b2.size + b3.size) * 4
        + B8 * _D_OUT_PAD * 2
    )

    out = pl.pallas_call(
        _mlp_kernel,
        out_shape=jax.ShapeDtypeStruct((B8, _D_OUT_PAD), jnp.bfloat16),
        grid_spec=pltpu.PrefetchScalarGridSpec(
            num_scalar_prefetch=0,
            grid=grid,
            in_specs=[
                pl.BlockSpec((tile, _D_IN), lambda i: (i, 0)),   # x batch tile
                full(w1), full(b1),
                full(w2), full(b2),
                full(w3), full(b3),
            ],
            out_specs=pl.BlockSpec((tile, _D_OUT_PAD), lambda i: (i, 0)),
        ),
        compiler_params=pltpu.CompilerParams(
            dimension_semantics=("parallel",),
            vmem_limit_bytes=48 * 1024 * 1024,   # headroom for 2048-row tiles on v5e
        ),
        cost_estimate=pl.CostEstimate(
            flops=flops,
            transcendentals=transcendentals,
            bytes_accessed=bytes_accessed,
        ),
    )(x, w1, b1, w2, b2, w3, b3)

    return out[:B, :_D_OUT]


# Jitted entry point (batch_tile is a static compile-time knob).
net_forward_jit = jax.jit(net_forward, static_argnames=("batch_tile",))


def init_params(key):
    """Mirror nn.Linear default init (uniform +/- 1/sqrt(fan_in)).
    Weights stored pre-transposed as (in_features, out_features)."""
    def linear(key, fan_in, fan_out):
        kw, kb = jax.random.split(key)
        bound = 1.0 / jnp.sqrt(fan_in)
        w = jax.random.uniform(kw, (fan_in, fan_out), jnp.float32, -bound, bound)
        b = jax.random.uniform(kb, (1, fan_out), jnp.float32, -bound, bound)
        return w, b

    k1, k2, k3 = jax.random.split(key, 3)
    w1, b1 = linear(k1, 784, 196)
    w2, b2 = linear(k2, 196, 50)
    w3, b3 = linear(k3, 50, 10)
    return {"w1": w1, "b1": b1, "w2": w2, "b2": b2, "w3": w3, "b3": b3}


def net_forward_ref(x, params):
    """Plain-JAX f32 reference for sanity checking."""
    h1 = jnp.maximum(x @ params["w1"] + params["b1"], 0.0)
    h2 = jnp.maximum(h1 @ params["w2"] + params["b2"], 0.0)
    logits = h2 @ params["w3"] + params["b3"]
    return jax.nn.softmax(logits, axis=-1)


if __name__ == "__main__":
    key = jax.random.PRNGKey(0)
    kx, kp = jax.random.split(key)

    params = init_params(kp)
    prepared = prepare_params(params)   # one-time pad + bf16 cast, reused below

    # 1) Small batch: tile auto-shrinks to 8, single grid step.
    B = 8
    x = jax.random.normal(kx, (B, 784), jnp.float32)
    out = jax.block_until_ready(net_forward_jit(x, prepared))
    ref = net_forward_ref(x, params)
    assert out.shape == (B, 10)
    out_f32 = out.astype(jnp.float32)
    # bf16 inputs/weights/output -> loosened tolerance vs f32 reference
    assert jnp.allclose(out_f32, ref, atol=2.5e-2, rtol=2.5e-2)
    assert jnp.allclose(jnp.sum(out_f32, axis=-1), jnp.ones((B,)), atol=2e-2)

    # 2) Ragged batch + multi-step grid (explicit small tile, partial last tile).
    B2 = 20
    x2 = jax.random.normal(jax.random.PRNGKey(1), (B2, 784), jnp.float32)
    out2 = jax.block_until_ready(net_forward_jit(x2, prepared, batch_tile=8))
    ref2 = net_forward_ref(x2, params)
    assert out2.shape == (B2, 10)
    assert jnp.allclose(out2.astype(jnp.float32), ref2, atol=2.5e-2, rtol=2.5e-2)

    # 3) Batch large enough to trigger the >=2-grid-step (megacore) split.
    B3 = 300
    x3 = jax.random.normal(jax.random.PRNGKey(2), (B3, 784), jnp.float32)
    out3 = jax.block_until_ready(net_forward_jit(x3, prepared))
    ref3 = net_forward_ref(x3, params)
    assert out3.shape == (B3, 10)
    assert jnp.allclose(out3.astype(jnp.float32), ref3, atol=2.5e-2, rtol=2.5e-2)

    print("KERNEL_OK")
</pallas_src>

<mosaic_0001>
module attributes {stable_mosaic.version = 11 : i64} {
  func.func @_mlp_kernel(%arg0: i32, %arg1: memref<8x784xf32, #tpu.memory_space<vmem>>, %arg2: memref<784x256xbf16, #tpu.memory_space<vmem>>, %arg3: memref<1x256xf32, #tpu.memory_space<vmem>>, %arg4: memref<256x128xbf16, #tpu.memory_space<vmem>>, %arg5: memref<1x128xf32, #tpu.memory_space<vmem>>, %arg6: memref<128x128xbf16, #tpu.memory_space<vmem>>, %arg7: memref<1x128xf32, #tpu.memory_space<vmem>>, %arg8: memref<8x128xbf16, #tpu.memory_space<vmem>>) attributes {dimension_semantics = [#tpu.dimension_semantics<parallel>], iteration_bounds = array<i64: 1>, scalar_prefetch = 0 : i64, scratch_operands = 0 : i64, tpu.core_type = #tpu.core_type<tc>, window_params = [{transform_indices = @transform_0, window_bounds = array<i64: 8, 784>}, {pipeline_mode = #tpu.pipeline_mode<synchronous>, transform_indices = @transform_1, window_bounds = array<i64: 784, 256>}, {pipeline_mode = #tpu.pipeline_mode<synchronous>, transform_indices = @transform_2, window_bounds = array<i64: 1, 256>}, {pipeline_mode = #tpu.pipeline_mode<synchronous>, transform_indices = @transform_3, window_bounds = array<i64: 256, 128>}, {pipeline_mode = #tpu.pipeline_mode<synchronous>, transform_indices = @transform_4, window_bounds = array<i64: 1, 128>}, {pipeline_mode = #tpu.pipeline_mode<synchronous>, transform_indices = @transform_5, window_bounds = array<i64: 128, 128>}, {pipeline_mode = #tpu.pipeline_mode<synchronous>, transform_indices = @transform_6, window_bounds = array<i64: 1, 128>}, {transform_indices = @transform_7, window_bounds = array<i64: 8, 128>}]} {
    %c0 = arith.constant 0 : index
    %c0_0 = arith.constant 0 : index
    %0 = vector.load %arg1[%c0, %c0_0] : memref<8x784xf32, #tpu.memory_space<vmem>>, vector<8x784xf32>
    %1 = arith.truncf %0 : vector<8x784xf32> to vector<8x784xbf16>
    %c0_1 = arith.constant 0 : index
    %c0_2 = arith.constant 0 : index
    %2 = vector.load %arg2[%c0_1, %c0_2] : memref<784x256xbf16, #tpu.memory_space<vmem>>, vector<784x256xbf16>
    %cst = arith.constant dense<0.000000e+00> : vector<8x256xf32>
    %3 = tpu.matmul %1, %2, %cst {dimension_numbers = #tpu.dot_dimension_numbers<[1], [0], [0], [1], [0, 0, 1, 1], [], []>} : vector<8x784xbf16>, vector<784x256xbf16>, vector<8x256xf32> -> vector<8x256xf32>
    %c0_3 = arith.constant 0 : index
    %c0_4 = arith.constant 0 : index
    %4 = vector.load %arg3[%c0_3, %c0_4] : memref<1x256xf32, #tpu.memory_space<vmem>>, vector<1x256xf32>
    %5 = vector.broadcast %4 : vector<1x256xf32> to vector<8x256xf32>
    %6 = arith.addf %3, %5 : vector<8x256xf32>
    %cst_5 = arith.constant 0.000000e+00 : f32
    %7 = vector.broadcast %cst_5 : f32 to vector<8x256xf32>
    %8 = arith.maximumf %6, %7 : vector<8x256xf32>
    %9 = arith.truncf %8 : vector<8x256xf32> to vector<8x256xbf16>
    %c0_6 = arith.constant 0 : index
    %c0_7 = arith.constant 0 : index
    %10 = vector.load %arg4[%c0_6, %c0_7] : memref<256x128xbf16, #tpu.memory_space<vmem>>, vector<256x128xbf16>
    %cst_8 = arith.constant dense<0.000000e+00> : vector<8x128xf32>
    %11 = tpu.matmul %9, %10, %cst_8 {dimension_numbers = #tpu.dot_dimension_numbers<[1], [0], [0], [1], [0, 0, 1, 1], [], []>} : vector<8x256xbf16>, vector<256x128xbf16>, vector<8x128xf32> -> vector<8x128xf32>
    %c0_9 = arith.constant 0 : index
    %c0_10 = arith.constant 0 : index
    %12 = vector.load %arg5[%c0_9, %c0_10] : memref<1x128xf32, #tpu.memory_space<vmem>>, vector<1x128xf32>
    %13 = vector.broadcast %12 : vector<1x128xf32> to vector<8x128xf32>
    %14 = arith.addf %11, %13 : vector<8x128xf32>
    %cst_11 = arith.constant 0.000000e+00 : f32
    %15 = vector.broadcast %cst_11 : f32 to vector<8x128xf32>
    %16 = arith.maximumf %14, %15 : vector<8x128xf32>
    %17 = arith.truncf %16 : vector<8x128xf32> to vector<8x128xbf16>
    %c0_12 = arith.constant 0 : index
    %c0_13 = arith.constant 0 : index
    %18 = vector.load %arg6[%c0_12, %c0_13] : memref<128x128xbf16, #tpu.memory_space<vmem>>, vector<128x128xbf16>
    %cst_14 = arith.constant dense<0.000000e+00> : vector<8x128xf32>
    %19 = tpu.matmul %17, %18, %cst_14 {dimension_numbers = #tpu.dot_dimension_numbers<[1], [0], [0], [1], [0, 0, 1, 1], [], []>} : vector<8x128xbf16>, vector<128x128xbf16>, vector<8x128xf32> -> vector<8x128xf32>
    %c0_15 = arith.constant 0 : index
    %c0_16 = arith.constant 0 : index
    %20 = vector.load %arg7[%c0_15, %c0_16] : memref<1x128xf32, #tpu.memory_space<vmem>>, vector<1x128xf32>
    %21 = vector.broadcast %20 : vector<1x128xf32> to vector<8x128xf32>
    %22 = arith.addf %19, %21 : vector<8x128xf32>
    %cst_17 = arith.constant dense<0xFF800000> : vector<8xf32>
    %23 = vector.multi_reduction <maximumf>, %22, %cst_17 [1] : vector<8x128xf32> to vector<8xf32>
    %24 = vector.shape_cast %23 : vector<8xf32> to vector<8x1xf32>
    %25 = vector.broadcast %24 : vector<8x1xf32> to vector<8x128xf32>
    %26 = arith.subf %22, %25 : vector<8x128xf32>
    %27 = math.exp %26 : vector<8x128xf32>
    %cst_18 = arith.constant dense<0.000000e+00> : vector<8xf32>
    %28 = vector.multi_reduction <add>, %27, %cst_18 [1] : vector<8x128xf32> to vector<8xf32>
    %29 = vector.shape_cast %28 : vector<8xf32> to vector<8x1xf32>
    %30 = tpu.reciprocal %29 {approx = true} : vector<8x1xf32> -> vector<8x1xf32>
    %31 = vector.broadcast %30 : vector<8x1xf32> to vector<8x128xf32>
    %32 = arith.mulf %27, %31 : vector<8x128xf32>
    %33 = arith.truncf %32 : vector<8x128xf32> to vector<8x128xbf16>
    %c0_19 = arith.constant 0 : index
    %c0_20 = arith.constant 0 : index
    %34 = vector.load %arg8[%c0_19, %c0_20] : memref<8x128xbf16, #tpu.memory_space<vmem>>, vector<8x128xbf16>
    tpu.vector_store %arg8[%c0_19, %c0_20], %33 {strides = array<i32>} : memref<8x128xbf16, #tpu.memory_space<vmem>>, vector<8x128xbf16>,
    return
  }
  func.func @transform_0(%arg0: i32) -> (i32, i32) {
    %c0_i32 = arith.constant 0 : i32
    %c0_i32_0 = arith.constant 0 : i32
    return %arg0, %c0_i32 : i32, i32
  }
  func.func @transform_1(%arg0: i32) -> (i32, i32) {
    %c0_i32 = arith.constant 0 : i32
    %c0_i32_0 = arith.constant 0 : i32
    %c0_i32_1 = arith.constant 0 : i32
    return %c0_i32, %c0_i32_0 : i32, i32
  }
  func.func @transform_2(%arg0: i32) -> (i32, i32) {
    %c0_i32 = arith.constant 0 : i32
    %c0_i32_0 = arith.constant 0 : i32
    %c0_i32_1 = arith.constant 0 : i32
    return %c0_i32, %c0_i32_0 : i32, i32
  }
  func.func @transform_3(%arg0: i32) -> (i32, i32) {
    %c0_i32 = arith.constant 0 : i32
    %c0_i32_0 = arith.constant 0 : i32
    %c0_i32_1 = arith.constant 0 : i32
    return %c0_i32, %c0_i32_0 : i32, i32
  }
  func.func @transform_4(%arg0: i32) -> (i32, i32) {
    %c0_i32 = arith.constant 0 : i32
    %c0_i32_0 = arith.constant 0 : i32
    %c0_i32_1 = arith.constant 0 : i32
    return %c0_i32, %c0_i32_0 : i32, i32
  }
  func.func @transform_5(%arg0: i32) -> (i32, i32) {
    %c0_i32 = arith.constant 0 : i32
    %c0_i32_0 = arith.constant 0 : i32
    %c0_i32_1 = arith.constant 0 : i32
    return %c0_i32, %c0_i32_0 : i32, i32
  }
  func.func @transform_6(%arg0: i32) -> (i32, i32) {
    %c0_i32 = arith.constant 0 : i32
    %c0_i32_0 = arith.constant 0 : i32
    %c0_i32_1 = arith.constant 0 : i32
    return %c0_i32, %c0_i32_0 : i32, i32
  }
  func.func @transform_7(%arg0: i32) -> (i32, i32) {
    %c0_i32 = arith.constant 0 : i32
    %c0_i32_0 = arith.constant 0 : i32
    return %arg0, %c0_i32 : i32, i32
  }
}

</mosaic_0001>

<bundles_post_ra>
// kernel: net_forward.1
= control target key start
LH: loop header
LB: loop body
LE: loop exit
PB: predicated region body
PF: predicated region fallthrough
CT: control target
= control target key end

     0   :  { %12 = vsyncpa [#allocation3], 0  ;;  %s2055_s0 = inlined_call_operand.hbm [shape: f32[8,784], index: 0, kind: input, shape index: {}]   ;;  %s2056_s1 = inlined_call_operand.hbm [shape: bf16[784,256], index: 1, kind: input, shape index: {}]   ;;  %s2057_s2 = inlined_call_operand.hbm [shape: f32[1,256], index: 2, kind: input, shape index: {}]   ;;  %s2058_s3 = inlined_call_operand.hbm [shape: bf16[256,128], index: 3, kind: input, shape index: {}]   ;;  %s2059_s4 = inlined_call_operand.vmem [shape: f32[1,128], index: 4, kind: input, shape index: {}]   ;;  %s2060_s5 = inlined_call_operand.hbm [shape: bf16[128,128], index: 5, kind: input, shape index: {}]   ;;  %s2061_s6 = inlined_call_operand.vmem [shape: f32[1,128], index: 6, kind: input, shape index: {}]   ;;  %s2062_s7 = inlined_call_operand.hbm [shape: bf16[8,128], index: 7, kind: output, shape index: {}]  }
   0x1   :  { %13 = vsyncpa [#allocation6], 0 }
   0x2   :  { %14 = vsyncpa [#allocation9], 0  ;;  %s31_s26 = sshll.u32 %s2056_s1, 4  ;;  %s32_s26 = int_to_ptr.hbm [resolvable:$true] %s31_s26 }
   0x3   :  { %15 = vsyncpa [#allocation4], 0  ;;  %s1951_s27 = smov [#allocation5]   ;;  %s55_s8 = sshll.u32 %s2058_s3, 4  ;;  %s56_s8 = int_to_ptr.hbm [resolvable:$true] %s55_s8 }
   0x4   :  { %s33_s28 = sshll.u32 %s1951_s27, 4  ;;  %s1952_s9 = smov 128   ;;  %s34_s28 = int_to_ptr.vmem [resolvable:$true] %s33_s28 }
   0x5   :  { %s1953_s10 = smov 8   ;;  %s1954_s11 = smov [#allocation8]  }
   0x6   :  { %39 = dma.hbm_to_vmem [thread:$0]  %s32_s26, 12544, %s34_s28, [#allocation6], %s1952_s9, %s1952_s9, %s1953_s10  }
   0x7   :  { %s57_s12 = sshll.u32 %s1954_s11, 4  ;;  %s1955_s13 = smov 64   ;;  %s58_s12 = int_to_ptr.vmem [resolvable:$true] %s57_s12 }
   0x8   :  { %s1956_s14 = smov 4   ;;  %s21_s16 = sshll.u32 %s2055_s0, 4  ;;  %s22_s16 = int_to_ptr.hbm [resolvable:$true] %s21_s16 }
   0x9   :  { %63 = dma.hbm_to_vmem [thread:$0]  %s56_s8, 2048, %s58_s12, [#allocation9], %s1955_s13, %s1955_s13, %s1956_s14  }
   0xa   :  { %s1957_s17 = smov [#allocation2]   ;;  %s45_s20 = sshll.u32 %s2057_s2, 4  ;;  %s46_s20 = int_to_ptr.hbm [resolvable:$true] %s45_s20 }
   0xb   :  { %s23_s18 = sshll.u32 %s1957_s17, 4  ;;  %s1958_s21 = smov [#allocation7]   ;;  %s24_s18 = int_to_ptr.vmem [resolvable:$true] %s23_s18 }
   0xc   :  { %26 = dma.hbm_to_vmem [thread:$0]  %s22_s16, 896, %s24_s18, [#allocation3]  }
   0xd   :  { %s47_s22 = sshll.u32 %s1958_s21, 4  ;;  %s70_s25 = sshll.u32 %s2060_s5, 4  ;;  %s48_s22 = int_to_ptr.vmem [resolvable:$true] %s47_s22  ;;  %s71_s25 = int_to_ptr.hbm [resolvable:$true] %s70_s25 }
   0xe   :  { %50 = dma.hbm_to_vmem [thread:$0]  %s46_s20, 32, %s48_s22, [#allocation6]  }
   0xf   :  { %s1959_s0 = smov [#allocation10]  }
  0x10   :  { %s72_s26 = sshll.u32 %s1959_s0, 4  ;;  %s73_s26 = int_to_ptr.vmem [resolvable:$true] %s72_s26 }
  0x11   :  { %78 = dma.hbm_to_vmem [thread:$0]  %s71_s25, 1024, %s73_s26, [#allocation9], %s1955_s13, %s1955_s13, %s1956_s14  }
  0x12   :  { %1943 = dma.done.wait [#allocation3], 896  }
  0x13   :  { %1944 = vsyncadd [#allocation3], 4294966400 }
  0x14   :  { %1945 = dma.done.wait [#allocation6], 12576  }
  0x15   :  { %1946 = vsyncadd [#allocation6], 4294954720 }
  0x16   :  { %1947 = dma.done.wait [#allocation9], 3072  }
  0x17   :  { %1948 = vsyncadd [#allocation9], 4294964224  ;;  %v1229_v0 = vld [vmem:[#allocation5 + $0x70] sm:$0xf]  ;;  %v1676_v1 = vld [vmem:[#allocation5 + $0x74] sm:$0xf0] }
  0x18   :  { %v1357_v2 = vld [vmem:[#allocation5 + $0x170] sm:$0xf]  ;;  %v1230_v3 = vor.u32 %v1676_v1, %v1229_v0  ;;  %v1708_v4 = vld [vmem:[#allocation5 + $0x174] sm:$0xf0]  ;;  %v1221_v11 = vld [vmem:[#allocation5 + $0x60] sm:$0xf] }
  0x19   :  { %v1421_v5 = vld [vmem:[#allocation5 + $0x1f0] sm:$0xf]  ;;  %v1724_v6 = vld [vmem:[#allocation5 + $0x1f4] sm:$0xf0]  ;;  %v1358_v7 = vor.u32 %v1708_v4, %v1357_v2  ;;  %v1674_v13 = vld [vmem:[#allocation5 + $0x64] sm:$0xf0] }
  0x1a   :  { %v1422_v8 = vor.u32 %v1724_v6, %v1421_v5  ;;  %v1293_v9 = vld [vmem:[#allocation5 + $0xf0] sm:$0xf]  ;;  %v1692_v10 = vld [vmem:[#allocation5 + $0xf4] sm:$0xf0]  ;;  %714 = vmatpush.bf16.msra.mxu0 %v1230_v3  ;;  %v1349_v14 = vld [vmem:[#allocation5 + $0x160] sm:$0xf]  ;;  %v1222_v16 = vor.u32 %v1674_v13, %v1221_v11 }
  0x1b   :  { %v1294_v12 = vor.u32 %v1692_v10, %v1293_v9  ;;  %v1706_v15 = vld [vmem:[#allocation5 + $0x164] sm:$0xf0]  ;;  %740 = vmatpush.bf16.msra.mxu2 %v1358_v7  ;;  %v1413_v18 = vld [vmem:[#allocation5 + $0x1e0] sm:$0xf]  ;;  %v1213_v23 = vld [vmem:[#allocation5 + $0x50] sm:$0xf] }
  0x1c   :  { %753 = vmatpush.bf16.msra.mxu3 %v1422_v8  ;;  %v1350_v17 = vor.u32 %v1706_v15, %v1349_v14  ;;  %v1722_v19 = vld [vmem:[#allocation5 + $0x1e4] sm:$0xf0]  ;;  %v1285_v20 = vld [vmem:[#allocation5 + $0xe0] sm:$0xf]  ;;  %v1672_v24 = vld [vmem:[#allocation5 + $0x54] sm:$0xf0] }
  0x1d   :  { %727 = vmatpush.bf16.msra.mxu1 %v1294_v12  ;;  %v1414_v21 = vor.u32 %v1722_v19, %v1413_v18  ;;  %v1690_v22 = vld [vmem:[#allocation5 + $0xe4] sm:$0xf0]  ;;  %v1341_v26 = vld [vmem:[#allocation5 + $0x150] sm:$0xf]  ;;  %v1704_v27 = vld [vmem:[#allocation5 + $0x154] sm:$0xf0]  ;;  %v1214_v29 = vor.u32 %v1672_v24, %v1213_v23 }
  0x1e   :  { %v1286_v25 = vor.u32 %v1690_v22, %v1285_v20  ;;  %v1405_v28 = vld [vmem:[#allocation5 + $0x1d0] sm:$0xf]  ;;  %715 = vmatpush.bf16.msra.mxu0 %v1222_v16  ;;  %v1720_v30 = vld [vmem:[#allocation5 + $0x1d4] sm:$0xf0]  ;;  %v1342_v33 = vor.u32 %v1704_v27, %v1341_v26  ;;  %v1205_v35 = vld [vmem:[#allocation5 + $0x40] sm:$0xf] }
  0x1f   :  { %v1277_v31 = vld [vmem:[#allocation5 + $0xd0] sm:$0xf]  ;;  %v1688_v32 = vld [vmem:[#allocation5 + $0xd4] sm:$0xf0]  ;;  %741 = vmatpush.bf16.msra.mxu2 %v1350_v17  ;;  %v1406_v34 = vor.u32 %v1720_v30, %v1405_v28  ;;  %v1670_v36 = vld [vmem:[#allocation5 + $0x44] sm:$0xf0] }
  0x20   :  { %754 = vmatpush.bf16.msra.mxu3 %v1414_v21  ;;  %v1333_v37 = vld [vmem:[#allocation5 + $0x140] sm:$0xf]  ;;  %v1278_v38 = vor.u32 %v1688_v32, %v1277_v31  ;;  %v1702_v39 = vld [vmem:[#allocation5 + $0x144] sm:$0xf0]  ;;  %v1206_v44 = vor.u32 %v1670_v36, %v1205_v35  ;;  %v1197_v47 = vld [vmem:[#allocation5 + $0x30] sm:$0xf] }
  0x21   :  { %728 = vmatpush.bf16.msra.mxu1 %v1286_v25  ;;  %v1397_v40 = vld [vmem:[#allocation5 + $0x1c0] sm:$0xf]  ;;  %v1718_v41 = vld [vmem:[#allocation5 + $0x1c4] sm:$0xf0]  ;;  %v1334_v45 = vor.u32 %v1702_v39, %v1333_v37  ;;  %v1668_v48 = vld [vmem:[#allocation5 + $0x34] sm:$0xf0] }
  0x22   :  { %v1269_v42 = vld [vmem:[#allocation5 + $0xc0] sm:$0xf]  ;;  %v1686_v43 = vld [vmem:[#allocation5 + $0xc4] sm:$0xf0]  ;;  %716 = vmatpush.bf16.msra.mxu0 %v1214_v29  ;;  %v1398_v46 = vor.u32 %v1718_v41, %v1397_v40  ;;  %v1325_v49 = vld [vmem:[#allocation5 + $0x130] sm:$0xf]  ;;  %v1198_v56 = vor.u32 %v1668_v48, %v1197_v47 }
  0x23   :  { %742 = vmatpush.bf16.msra.mxu2 %v1342_v33  ;;  %v1270_v50 = vor.u32 %v1686_v43, %v1269_v42  ;;  %v1700_v51 = vld [vmem:[#allocation5 + $0x134] sm:$0xf0]  ;;  %v1389_v52 = vld [vmem:[#allocation5 + $0x1b0] sm:$0xf]  ;;  %v1189_v59 = vld [vmem:[#allocation5 + $0x20] sm:$0xf] }
  0x24   :  { %755 = vmatpush.bf16.msra.mxu3 %v1406_v34  ;;  %v1716_v53 = vld [vmem:[#allocation5 + $0x1b4] sm:$0xf0]  ;;  %v1261_v54 = vld [vmem:[#allocation5 + $0xb0] sm:$0xf]  ;;  %v1326_v57 = vor.u32 %v1700_v51, %v1325_v49  ;;  %v1666_v60 = vld [vmem:[#allocation5 + $0x24] sm:$0xf0] }
  0x25   :  { %729 = vmatpush.bf16.msra.mxu1 %v1278_v38  ;;  %v1684_v55 = vld [vmem:[#allocation5 + $0xb4] sm:$0xf0]  ;;  %v1390_v58 = vor.u32 %v1716_v53, %v1389_v52  ;;  %v1317_v61 = vld [vmem:[#allocation5 + $0x120] sm:$0xf]  ;;  %v1698_v63 = vld [vmem:[#allocation5 + $0x124] sm:$0xf0]  ;;  %v1190_v4 = vor.u32 %v1666_v60, %v1189_v59 }
  0x26   :  { %717 = vmatpush.bf16.msra.mxu0 %v1206_v44  ;;  %v1262_v62 = vor.u32 %v1684_v55, %v1261_v54  ;;  %v1381_v0 = vld [vmem:[#allocation5 + $0x1a0] sm:$0xf]  ;;  %v1714_v1 = vld [vmem:[#allocation5 + $0x1a4] sm:$0xf0]  ;;  %v1318_v5 = vor.u32 %v1698_v63, %v1317_v61  ;;  %v1181_v7 = vld [vmem:[#allocation5 + $0x10] sm:$0xf] }
  0x27   :  { %743 = vmatpush.bf16.msra.mxu2 %v1334_v45  ;;  %v1253_v2 = vld [vmem:[#allocation5 + $0xa0] sm:$0xf]  ;;  %v1682_v3 = vld [vmem:[#allocation5 + $0xa4] sm:$0xf0]  ;;  %v1382_v6 = vor.u32 %v1714_v1, %v1381_v0  ;;  %v1664_v8 = vld [vmem:[#allocation5 + $0x14] sm:$0xf0] }
  0x28   :  { %756 = vmatpush.bf16.msra.mxu3 %v1398_v46  ;;  %v1309_v9 = vld [vmem:[#allocation5 + $0x110] sm:$0xf]  ;;  %v1254_v10 = vor.u32 %v1682_v3, %v1253_v2  ;;  %v1696_v11 = vld [vmem:[#allocation5 + $0x114] sm:$0xf0]  ;;  %v1182_v16 = vor.u32 %v1664_v8, %v1181_v7  ;;  %v1173_v17 = vld [vmem:[#allocation5] sm:$0xf] }
  0x29   :  { %730 = vmatpush.bf16.msra.mxu1 %v1270_v50  ;;  %v1373_v12 = vld [vmem:[#allocation5 + $0x190] sm:$0xf]  ;;  %v1712_v13 = vld [vmem:[#allocation5 + $0x194] sm:$0xf0]  ;;  %v1662_v18 = vld [vmem:[#allocation5 + $0x4] sm:$0xf0]  ;;  %v1310_v20 = vor.u32 %v1696_v11, %v1309_v9 }
  0x2a   :  { %718 = vmatpush.bf16.msra.mxu0 %v1198_v56  ;;  %v1245_v14 = vld [vmem:[#allocation5 + $0x90] sm:$0xf]  ;;  %v1680_v15 = vld [vmem:[#allocation5 + $0x94] sm:$0xf0]  ;;  %v1301_v19 = vld [vmem:[#allocation5 + $0x100] sm:$0xf]  ;;  %v1374_v21 = vor.u32 %v1712_v13, %v1373_v12  ;;  %v1174_v32 = vor.u32 %v1662_v18, %v1173_v17 }
  0x2b   :  { %744 = vmatpush.bf16.msra.mxu2 %v1326_v57  ;;  %v1694_v22 = vld [vmem:[#allocation5 + $0x104] sm:$0xf0]  ;;  %v1365_v23 = vld [vmem:[#allocation5 + $0x180] sm:$0xf]  ;;  %v1246_v25 = vor.u32 %v1680_v15, %v1245_v14  ;;  %v1485_v26 = vld [vmem:[#allocation5 + $0x270] sm:$0xf] }
  0x2c   :  { %757 = vmatpush.bf16.msra.mxu3 %v1390_v58  ;;  %v1710_v24 = vld [vmem:[#allocation5 + $0x184] sm:$0xf0]  ;;  %v1740_v27 = vld [vmem:[#allocation5 + $0x274] sm:$0xf0]  ;;  %v1675_v28 = vld [vmem:[#allocation5 + $0x74] sm:$0xf]  ;;  %v1302_v36 = vor.u32 %v1694_v22, %v1301_v19 }
  0x2d   :  { %731 = vmatpush.bf16.msra.mxu1 %v1262_v62  ;;  %v1231_v29 = vld [vmem:[#allocation5 + $0x78] sm:$0xf0]  ;;  %v1237_v30 = vld [vmem:[#allocation5 + $0x80] sm:$0xf]  ;;  %v1678_v31 = vld [vmem:[#allocation5 + $0x84] sm:$0xf0]  ;;  %v1366_v37 = vor.u32 %v1710_v24, %v1365_v23  ;;  %v1486_v41 = vor.u32 %v1740_v27, %v1485_v26 }
  0x2e   :  { %719 = vmatpush.bf16.msra.mxu0 %v1190_v4  ;;  %v104_v33 = vld [vmem:[#allocation2 + $0x10] sm:$0xff]  ;;  %v1557_v34 = vld [vmem:[#allocation5 + $0x300] sm:$0xf]  ;;  %v1758_v35 = vld [vmem:[#allocation5 + $0x304] sm:$0xf0]  ;;  %v1234_v42 = vor.u32 %v1675_v28, %v1231_v29  ;;  %v1238_v46 = vor.u32 %v1678_v31, %v1237_v30  ;;  %vm710_vm0 = vcmask 130048  }
  0x2f   :  { %745 = vmatpush.bf16.msra.mxu2 %v1318_v5  ;;  %v1549_v38 = vld [vmem:[#allocation5 + $0x2f0] sm:$0xf]  ;;  %v1756_v39 = vld [vmem:[#allocation5 + $0x2f4] sm:$0xf0]  ;;  %v1691_v40 = vld [vmem:[#allocation5 + $0xf4] sm:$0xf]  ;;  %v1558_v47 = vor.u32 %v1758_v35, %v1557_v34  ;;  %v2016_v51 = vpack.c.bf16 %v104_v33, %v104_v33 }
  0x30   :  { %758 = vmatpush.bf16.msra.mxu3 %v1382_v6  ;;  %v1295_v43 = vld [vmem:[#allocation5 + $0xf8] sm:$0xf0]  ;;  %v1477_v44 = vld [vmem:[#allocation5 + $0x260] sm:$0xf]  ;;  %v102_v45 = vld [vmem:[#allocation2] sm:$0xff]  ;;  %v1550_v52 = vor.u32 %v1756_v39, %v1549_v38  ;;  %s1159_s9 = sshll.u32 %s2062_s7, 4  ;;  %s1160_s9 = int_to_ptr.hbm [resolvable:$true] %s1159_s9 }
  0x31   :  { %732 = vmatpush.bf16.msra.mxu1 %v1254_v10  ;;  %v1738_v48 = vld [vmem:[#allocation5 + $0x264] sm:$0xf0]  ;;  %v1673_v49 = vld [vmem:[#allocation5 + $0x64] sm:$0xf]  ;;  %v1223_v50 = vld [vmem:[#allocation5 + $0x68] sm:$0xf0]  ;;  %v1298_v55 = vor.u32 %v1691_v40, %v1295_v43  ;;  %v2018_v56 = vpack.c.bf16 %v102_v45, %v102_v45 }
  0x32   :  { %720 = vmatpush.bf16.msra.mxu0 %v1182_v16  ;;  %v105_v53 = vld [vmem:[#allocation2 + $0x18] sm:$0xff]  ;;  %v103_v54 = vld [vmem:[#allocation2 + $0x8] sm:$0xff]  ;;  %v1754_v58 = vld [vmem:[#allocation5 + $0x2e4] sm:$0xf0]  ;;  %v1478_v59 = vor.u32 %v1738_v48, %v1477_v44  ;;  %v1226_v60 = vor.u32 %v1673_v49, %v1223_v50 }
  0x33   :  { %746 = vmatpush.bf16.msra.mxu2 %v1310_v20  ;;  %v1541_v57 = vld [vmem:[#allocation5 + $0x2e0] sm:$0xf]  ;;  %v1689_v61 = vld [vmem:[#allocation5 + $0xe4] sm:$0xf]  ;;  %v1287_v62 = vld [vmem:[#allocation5 + $0xe8] sm:$0xf0]  ;;  %v2020_v0 = vpack.c.bf16 %v105_v53, %v105_v53  ;;  %v2022_v1 = vpack.c.bf16 %v103_v54, %v103_v54 }
  0x34   :  { %759 = vmatpush.bf16.msra.mxu3 %v1374_v21  ;;  %v1469_v63 = vld [vmem:[#allocation5 + $0x250] sm:$0xf]  ;;  %v1736_v2 = vld [vmem:[#allocation5 + $0x254] sm:$0xf0]  ;;  %v1671_v3 = vld [vmem:[#allocation5 + $0x54] sm:$0xf]  ;;  %v1542_v5 = vor.u32 %v1754_v58, %v1541_v57  ;;  %v1290_v6 = vor.u32 %v1689_v61, %v1287_v62 }
  0x35   :  { %733 = vmatpush.bf16.msra.mxu1 %v1246_v25  ;;  %v1215_v4 = vld [vmem:[#allocation5 + $0x58] sm:$0xf0]  ;;  %v1533_v7 = vld [vmem:[#allocation5 + $0x2d0] sm:$0xf]  ;;  %v1752_v8 = vld [vmem:[#allocation5 + $0x2d4] sm:$0xf0]  ;;  %v1470_v9 = vor.u32 %v1736_v2, %v1469_v63 }
  0x36   :  { %721 = vmatpush.bf16.msra.mxu0 %v1174_v32  ;;  %v1218_v10 = vor.u32 %v1671_v3, %v1215_v4  ;;  %v1687_v11 = vld [vmem:[#allocation5 + $0xd4] sm:$0xf]  ;;  %v1279_v12 = vld [vmem:[#allocation5 + $0xd8] sm:$0xf0]  ;;  %v1461_v13 = vld [vmem:[#allocation5 + $0x240] sm:$0xf]  ;;  %v1534_v17 = vor.u32 %v1752_v8, %v1533_v7 }
  0x37   :  { %747 = vmatpush.bf16.msra.mxu2 %v1302_v36  ;;  %v1734_v14 = vld [vmem:[#allocation5 + $0x244] sm:$0xf0]  ;;  %v1669_v15 = vld [vmem:[#allocation5 + $0x44] sm:$0xf]  ;;  %v1207_v16 = vld [vmem:[#allocation5 + $0x48] sm:$0xf0]  ;;  %v1282_v18 = vor.u32 %v1687_v11, %v1279_v12 }
  0x38   :  { %760 = vmatpush.bf16.msra.mxu3 %v1366_v37  ;;  %v1525_v19 = vld [vmem:[#allocation5 + $0x2c0] sm:$0xf]  ;;  %v1750_v20 = vld [vmem:[#allocation5 + $0x2c4] sm:$0xf0]  ;;  %v1462_v21 = vor.u32 %v1734_v14, %v1461_v13  ;;  %v1210_v22 = vor.u32 %v1669_v15, %v1207_v16  ;;  %v1685_v23 = vld [vmem:[#allocation5 + $0xc4] sm:$0xf] }
  0x39   :  { %734 = vmatpush.bf16.msra.mxu1 %v1238_v46  ;;  %722 = vmatmul.bf16.vlgmr.msra.gmra.mxu0 %v2018_v56  ;;  %v1271_v24 = vld [vmem:[#allocation5 + $0xc8] sm:$0xf0]  ;;  %v1453_v25 = vld [vmem:[#allocation5 + $0x230] sm:$0xf]  ;;  %v1732_v26 = vld [vmem:[#allocation5 + $0x234] sm:$0xf0]  ;;  %v1526_v29 = vor.u32 %v1750_v20, %v1525_v19 }
  0x3a   :  { %766 = vmatpush.bf16.msrb.mxu0 %v1486_v41  ;;  %748 = vmatmul.bf16.vlgmr.msra.gmra.mxu2 %v2016_v51  ;;  %v1667_v27 = vld [vmem:[#allocation5 + $0x34] sm:$0xf]  ;;  %v1199_v28 = vld [vmem:[#allocation5 + $0x38] sm:$0xf0]  ;;  %v1274_v30 = vor.u32 %v1685_v23, %v1271_v24  ;;  %v1517_v31 = vld [vmem:[#allocation5 + $0x2b0] sm:$0xf]  ;;  %v1454_v34 = vor.u32 %v1732_v26, %v1453_v25 }
  0x3b   :  { %799 = vmatpush.bf16.msrb.mxu2 %v1558_v47  ;;  %761 = vmatmul.bf16.vlgmr.msra.gmra.mxu3 %v2020_v0  ;;  %v1748_v32 = vld [vmem:[#allocation5 + $0x2b4] sm:$0xf0]  ;;  %v1202_v35 = vor.u32 %v1667_v27, %v1199_v28  ;;  %v1683_v36 = vld [vmem:[#allocation5 + $0xb4] sm:$0xf]  ;;  %v1263_v37 = vld [vmem:[#allocation5 + $0xb8] sm:$0xf0] }
  0x3c   :  { %805 = vmatpush.bf16.msrb.mxu3 %v1234_v42  ;;  %735 = vmatmul.bf16.vlgmr.msra.gmra.mxu1 %v2022_v1  ;;  %v108_v33 = vld [vmem:[#allocation2 + $0x30] sm:$0xff]  ;;  %v1445_v38 = vld [vmem:[#allocation5 + $0x220] sm:$0xf]  ;;  %v1730_v39 = vld [vmem:[#allocation5 + $0x224] sm:$0xf0]  ;;  %v1518_v42 = vor.u32 %v1748_v32, %v1517_v31  ;;  %v1266_v44 = vor.u32 %v1683_v36, %v1263_v37 }
  0x3d   :  { %779 = vmatpush.bf16.msrb.mxu1 %v1550_v52  ;;  %v1665_v40 = vld [vmem:[#allocation5 + $0x24] sm:$0xf]  ;;  %v1191_v41 = vld [vmem:[#allocation5 + $0x28] sm:$0xf0]  ;;  %v2028_v43 = vpack.c.bf16 %v108_v33, %v108_v33  ;;  %v1509_v45 = vld [vmem:[#allocation5 + $0x2a0] sm:$0xf]  ;;  %v1446_v47 = vor.u32 %v1730_v39, %v1445_v38 }
  0x3e   :  { %767 = vmatpush.bf16.msrb.mxu0 %v1478_v59  ;;  %v1746_v46 = vld [vmem:[#allocation5 + $0x2a4] sm:$0xf0]  ;;  %v1194_v48 = vor.u32 %v1665_v40, %v1191_v41  ;;  %v1681_v49 = vld [vmem:[#allocation5 + $0xa4] sm:$0xf]  ;;  %v1255_v50 = vld [vmem:[#allocation5 + $0xa8] sm:$0xf0] }
  0x3f   :  { %818 = vmatpush.bf16.msra.mxu2 %v1298_v55  ;;  %v1437_v52 = vld [vmem:[#allocation5 + $0x210] sm:$0xf]  ;;  %v1728_v53 = vld [vmem:[#allocation5 + $0x214] sm:$0xf0]  ;;  %v1663_v54 = vld [vmem:[#allocation5 + $0x14] sm:$0xf]  ;;  %v1510_v57 = vor.u32 %v1746_v46, %v1509_v45  ;;  %v1258_v58 = vor.u32 %v1681_v49, %v1255_v50 }
  0x40   :  { %806 = vmatpush.bf16.msrb.mxu3 %v1226_v60  ;;  %v1183_v55 = vld [vmem:[#allocation5 + $0x18] sm:$0xf0]  ;;  %v1501_v59 = vld [vmem:[#allocation5 + $0x290] sm:$0xf]  ;;  %v1744_v60 = vld [vmem:[#allocation5 + $0x294] sm:$0xf0]  ;;  %v1438_v62 = vor.u32 %v1728_v53, %v1437_v52 }
  0x41   :  { %780 = vmatpush.bf16.msrb.mxu1 %v1542_v5  ;;  %v1679_v61 = vld [vmem:[#allocation5 + $0x94] sm:$0xf]  ;;  %v1186_v63 = vor.u32 %v1663_v54, %v1183_v55  ;;  %v1247_v2 = vld [vmem:[#allocation5 + $0x98] sm:$0xf0]  ;;  %v1429_v3 = vld [vmem:[#allocation5 + $0x200] sm:$0xf]  ;;  %v1502_v8 = vor.u32 %v1744_v60, %v1501_v59 }
  0x42   :  { %768 = vmatpush.bf16.msrb.mxu0 %v1470_v9  ;;  %v1726_v4 = vld [vmem:[#allocation5 + $0x204] sm:$0xf0]  ;;  %v1661_v5 = vld [vmem:[#allocation5 + $0x4] sm:$0xf]  ;;  %v1707_v7 = vld [vmem:[#allocation5 + $0x174] sm:$0xf]  ;;  %v1250_v12 = vor.u32 %v1679_v61, %v1247_v2 }
  0x43   :  { %819 = vmatpush.bf16.msra.mxu2 %v1290_v6  ;;  %v1175_v6 = vld [vmem:[#allocation5 + $0x8] sm:$0xf0]  ;;  %v1359_v9 = vld [vmem:[#allocation5 + $0x178] sm:$0xf0]  ;;  %v1493_v13 = vld [vmem:[#allocation5 + $0x280] sm:$0xf]  ;;  %v1430_v16 = vor.u32 %v1726_v4, %v1429_v3 }
  0x44   :  { %807 = vmatpush.bf16.msrb.mxu3 %v1218_v10  ;;  %v1739_v10 = vld [vmem:[#allocation5 + $0x274] sm:$0xf]  ;;  %v1487_v11 = vld [vmem:[#allocation5 + $0x278] sm:$0xf0]  ;;  %v1742_v14 = vld [vmem:[#allocation5 + $0x284] sm:$0xf0] }
  0x45   :  { %781 = vmatpush.bf16.msrb.mxu1 %v1534_v17  ;;  %v106_v15 = vld [vmem:[#allocation2 + $0x20] sm:$0xff]  ;;  %v1178_v17 = vor.u32 %v1661_v5, %v1175_v6  ;;  %v1723_v20 = vld [vmem:[#allocation5 + $0x1f4] sm:$0xf]  ;;  %v1423_v23 = vld [vmem:[#allocation5 + $0x1f8] sm:$0xf0]  ;;  %v1494_v26 = vor.u32 %v1742_v14, %v1493_v13 }
  0x46   :  { %769 = vmatpush.bf16.msrb.mxu0 %v1462_v21  ;;  %v1239_v19 = vld [vmem:[#allocation5 + $0x88] sm:$0xf0]  ;;  %v1362_v21 = vor.u32 %v1707_v7, %v1359_v9  ;;  %v1755_v24 = vld [vmem:[#allocation5 + $0x2f4] sm:$0xf]  ;;  %v1551_v25 = vld [vmem:[#allocation5 + $0x2f8] sm:$0xf0] }
  0x47   :  { %820 = vmatpush.bf16.msra.mxu2 %v1282_v18  ;;  %v1677_v18 = vld [vmem:[#allocation5 + $0x84] sm:$0xf]  ;;  %v107_v27 = vld [vmem:[#allocation2 + $0x28] sm:$0xff]  ;;  %v1479_v33 = vld [vmem:[#allocation5 + $0x268] sm:$0xf0] }
  0x48   :  { %808 = vmatpush.bf16.msrb.mxu3 %v1210_v22  ;;  %v1490_v22 = vor.u32 %v1739_v10, %v1487_v11  ;;  %v1705_v28 = vld [vmem:[#allocation5 + $0x164] sm:$0xf]  ;;  %v1242_v31 = vor.u32 %v1677_v18, %v1239_v19  ;;  %v2034_v37 = vpack.c.bf16 %v107_v27, %v107_v27  ;;  %v1415_v39 = vld [vmem:[#allocation5 + $0x1e8] sm:$0xf0]  ;;  %v1343_v45 = vld [vmem:[#allocation5 + $0x158] sm:$0xf0] }
  0x49   :  { %782 = vmatpush.bf16.msrb.mxu1 %v1526_v29  ;;  %v1351_v29 = vld [vmem:[#allocation5 + $0x168] sm:$0xf0]  ;;  %v1737_v32 = vld [vmem:[#allocation5 + $0x264] sm:$0xf]  ;;  %v1735_v46 = vld [vmem:[#allocation5 + $0x254] sm:$0xf] }
  0x4a   :  { %770 = vmatpush.bf16.msrb.mxu0 %v1454_v34  ;;  %1563 = vmatmul.msk.bf16.vlgmr.msrb.gmra.mxu2 %vm710_vm0, %v2028_v43  ;;  %v1426_v34 = vor.u32 %v1723_v20, %v1423_v23  ;;  %v1721_v36 = vld [vmem:[#allocation5 + $0x1e4] sm:$0xf]  ;;  %v1354_v38 = vor.u32 %v1705_v28, %v1351_v29  ;;  %v1543_v41 = vld [vmem:[#allocation5 + $0x2e8] sm:$0xf0]  ;;  %v1719_v50 = vld [vmem:[#allocation5 + $0x1d4] sm:$0xf] }
  0x4b   :  { %821 = vmatpush.bf16.msra.mxu2 %v1274_v30  ;;  %v2032_v30 = vpack.c.bf16 %v106_v15, %v106_v15  ;;  %v1753_v40 = vld [vmem:[#allocation5 + $0x2e4] sm:$0xf]  ;;  %v1407_v53 = vld [vmem:[#allocation5 + $0x1d8] sm:$0xf0]  ;;  %v1751_v54 = vld [vmem:[#allocation5 + $0x2d4] sm:$0xf] }
  0x4c   :  { %809 = vmatpush.bf16.msrb.mxu3 %v1202_v35  ;;  %v1554_v35 = vor.u32 %v1755_v24, %v1551_v25  ;;  %v1546_v49 = vor.u32 %v1753_v40, %v1543_v41  ;;  %v1535_v55 = vld [vmem:[#allocation5 + $0x2d8] sm:$0xf0]  ;;  %v1335_v59 = vld [vmem:[#allocation5 + $0x148] sm:$0xf0]  ;;  %v1733_v60 = vld [vmem:[#allocation5 + $0x244] sm:$0xf] }
  0x4d   :  { %783 = vmatpush.bf16.msrb.mxu1 %v1518_v42  ;;  %v1482_v42 = vor.u32 %v1737_v32, %v1479_v33  ;;  %v1463_v61 = vld [vmem:[#allocation5 + $0x248] sm:$0xf0]  ;;  %v1717_v2 = vld [vmem:[#allocation5 + $0x1c4] sm:$0xf]  ;;  %v1731_v9 = vld [vmem:[#allocation5 + $0x234] sm:$0xf] }
  0x4e   :  { %771 = vmatpush.bf16.msrb.mxu0 %v1446_v47  ;;  %v1471_v47 = vld [vmem:[#allocation5 + $0x258] sm:$0xf0]  ;;  %v1399_v4 = vld [vmem:[#allocation5 + $0x1c8] sm:$0xf0]  ;;  %v1749_v5 = vld [vmem:[#allocation5 + $0x2c4] sm:$0xf]  ;;  %v1466_v7 = vor.u32 %v1733_v60, %v1463_v61 }
  0x4f   :  { %822 = vmatpush.bf16.msra.mxu2 %v1266_v44  ;;  %v1703_v44 = vld [vmem:[#allocation5 + $0x154] sm:$0xf]  ;;  %v1527_v6 = vld [vmem:[#allocation5 + $0x2c8] sm:$0xf0]  ;;  %v1455_v10 = vld [vmem:[#allocation5 + $0x238] sm:$0xf0]  ;;  %v1402_v11 = vor.u32 %v1717_v2, %v1399_v4 }
  0x50   :  { %810 = vmatpush.bf16.msrb.mxu3 %v1194_v48  ;;  %v1418_v48 = vor.u32 %v1721_v36, %v1415_v39  ;;  %v1346_v52 = vor.u32 %v1703_v44, %v1343_v45  ;;  %v1391_v14 = vld [vmem:[#allocation5 + $0x1b8] sm:$0xf0]  ;;  %v1747_v15 = vld [vmem:[#allocation5 + $0x2b4] sm:$0xf]  ;;  %v1697_v18 = vld [vmem:[#allocation5 + $0x124] sm:$0xf] }
  0x51   :  { %784 = vmatpush.bf16.msrb.mxu1 %v1510_v57  ;;  %v1474_v57 = vor.u32 %v1735_v46, %v1471_v47  ;;  %v1319_v19 = vld [vmem:[#allocation5 + $0x128] sm:$0xf0]  ;;  %v1729_v20 = vld [vmem:[#allocation5 + $0x224] sm:$0xf]  ;;  %v1311_v32 = vld [vmem:[#allocation5 + $0x118] sm:$0xf0] }
  0x52   :  { %772 = vmatpush.bf16.msrb.mxu0 %v1438_v62  ;;  %v1410_v62 = vor.u32 %v1719_v50, %v1407_v53  ;;  %v1713_v24 = vld [vmem:[#allocation5 + $0x1a4] sm:$0xf]  ;;  %v1322_v25 = vor.u32 %v1697_v18, %v1319_v19  ;;  %v1511_v28 = vld [vmem:[#allocation5 + $0x2a8] sm:$0xf0]  ;;  %v1727_v33 = vld [vmem:[#allocation5 + $0x214] sm:$0xf] }
  0x53   :  { %823 = vmatpush.bf16.msra.mxu2 %v1258_v58  ;;  %v1701_v58 = vld [vmem:[#allocation5 + $0x144] sm:$0xf]  ;;  %v1375_v40 = vld [vmem:[#allocation5 + $0x198] sm:$0xf0]  ;;  %v1743_v41 = vld [vmem:[#allocation5 + $0x294] sm:$0xf] }
  0x54   :  { %811 = vmatpush.bf16.msrb.mxu3 %v1186_v63  ;;  %v1538_v63 = vor.u32 %v1751_v54, %v1535_v55  ;;  %v1338_v3 = vor.u32 %v1701_v58, %v1335_v59  ;;  %v1745_v27 = vld [vmem:[#allocation5 + $0x2a4] sm:$0xf]  ;;  %v1303_v46 = vld [vmem:[#allocation5 + $0x108] sm:$0xf0]  ;;  %v1764_v4 = vld [vmem:[#allocation8 + $0x28] sm:$0xff] }
  0x55   :  { %785 = vmatpush.bf16.msrb.mxu1 %v1502_v8  ;;  %v1699_v8 = vld [vmem:[#allocation5 + $0x134] sm:$0xf]  ;;  %v1514_v36 = vor.u32 %v1745_v27, %v1511_v28  ;;  %v1693_v45 = vld [vmem:[#allocation5 + $0x104] sm:$0xf]  ;;  %v1367_v54 = vld [vmem:[#allocation5 + $0x188] sm:$0xf0] }
  0x56   :  { %773 = vmatpush.bf16.msrb.mxu0 %v1430_v16  ;;  %v1519_v16 = vld [vmem:[#allocation5 + $0x2b8] sm:$0xf0]  ;;  %v1725_v47 = vld [vmem:[#allocation5 + $0x204] sm:$0xf]  ;;  %v1495_v58 = vld [vmem:[#allocation5 + $0x288] sm:$0xf0] }
  0x57   :  { %824 = vmatpush.bf16.msra.mxu2 %v1250_v12  ;;  %v1715_v12 = vld [vmem:[#allocation5 + $0x1b4] sm:$0xf]  ;;  %v1522_v23 = vor.u32 %v1747_v15, %v1519_v16  ;;  %v1709_v53 = vld [vmem:[#allocation5 + $0x184] sm:$0xf]  ;;  %v1559_v60 = vld [vmem:[#allocation5 + $0x308] sm:$0xf0] }
  0x58   :  { %812 = vmatpush.bf16.msrb.mxu3 %v1178_v17  ;;  %v1458_v17 = vor.u32 %v1731_v9, %v1455_v10  ;;  %v1757_v59 = vld [vmem:[#allocation5 + $0x304] sm:$0xf]  ;;  %v1370_v61 = vor.u32 %v1709_v53, %v1367_v54  ;;  %v1766_v2 = vld [vmem:[#allocation8 + $0x38] sm:$0xff] }
  0x59   :  { %786 = vmatpush.bf16.msrb.mxu1 %v1494_v26  ;;  %774 = vmatmul.bf16.vlgmr.msrb.gmra.mxu0 %v2032_v30  ;;  %v1383_v26 = vld [vmem:[#allocation5 + $0x1a8] sm:$0xf0] }
  0x5a   :  { %831 = vmatpush.bf16.msra.mxu0 %v1362_v21  ;;  %v1447_v21 = vld [vmem:[#allocation5 + $0x228] sm:$0xf0] }
  0x5b   :  { %825 = vmatpush.bf16.msra.mxu2 %v1242_v31  ;;  %813 = vmatmul.bf16.vlgmr.msrb.gmra.mxu3 %v2018_v56  ;;  %v1530_v56 = vor.u32 %v1749_v5, %v1527_v6  ;;  %v1450_v29 = vor.u32 %v1729_v20, %v1447_v21  ;;  %v1695_v31 = vld [vmem:[#allocation5 + $0x114] sm:$0xf]  ;;  %v1760_v6 = vld [vmem:[#allocation8 + $0x8] sm:$0xff] }
  0x5c   :  { %857 = vmatpush.bf16.msra.mxu3 %v1490_v22  ;;  %787 = vmatmul.bf16.vlgmr.msrb.gmra.mxu1 %v2034_v37  ;;  %v1394_v22 = vor.u32 %v1715_v12, %v1391_v14  ;;  %v1314_v39 = vor.u32 %v1695_v31, %v1311_v32  ;;  %v1763_v5 = vld [vmem:[#allocation8 + $0x20] sm:$0xff] }
  0x5d   :  { %844 = vmatpush.bf16.msra.mxu1 %v1426_v34  ;;  %v1439_v34 = vld [vmem:[#allocation5 + $0x218] sm:$0xf0] }
  0x5e   :  { %832 = vmatpush.bf16.msra.mxu0 %v1354_v38  ;;  %826 = vmatmul.bf16.vlgmr.msra.gmra.mxu2 %v2022_v1  ;;  %v1327_v1 = vld [vmem:[#allocation5 + $0x138] sm:$0xf0]  ;;  %v1711_v38 = vld [vmem:[#allocation5 + $0x194] sm:$0xf]  ;;  %v1442_v44 = vor.u32 %v1727_v33, %v1439_v34 }
  0x5f   :  { %870 = vmatpush.bf16.msrb.mxu2 %v1554_v35  ;;  %v1330_v13 = vor.u32 %v1699_v8, %v1327_v1  ;;  %v1386_v35 = vor.u32 %v1713_v24, %v1383_v26  ;;  %v1772_v26 = vld [vmem:[#allocation8 + $0x68] sm:$0xff] }
  0x60   :  { %858 = vmatpush.bf16.msra.mxu3 %v1482_v42  ;;  %v1503_v42 = vld [vmem:[#allocation5 + $0x298] sm:$0xf0] }
  0x61   :  { %845 = vmatpush.bf16.msra.mxu1 %v1418_v48  ;;  %v1431_v48 = vld [vmem:[#allocation5 + $0x208] sm:$0xf0]  ;;  %v1506_v50 = vor.u32 %v1743_v41, %v1503_v42  ;;  %v1767_v41 = vld [vmem:[#allocation8 + $0x40] sm:$0xff] }
  0x62   :  { %833 = vmatpush.bf16.msra.mxu0 %v1346_v52  ;;  %v1306_v52 = vor.u32 %v1693_v45, %v1303_v46  ;;  %v1434_v55 = vor.u32 %v1725_v47, %v1431_v48 }
  0x63   :  { %871 = vmatpush.bf16.msrb.mxu2 %v1546_v49  ;;  %v1378_v49 = vor.u32 %v1711_v38, %v1375_v40  ;;  %v1768_v40 = vld [vmem:[#allocation8 + $0x48] sm:$0xff] }
  0x64   :  { %859 = vmatpush.bf16.msra.mxu3 %v1474_v57  ;;  %v1741_v57 = vld [vmem:[#allocation5 + $0x284] sm:$0xf] }
  0x65   :  { %846 = vmatpush.bf16.msra.mxu1 %v1410_v62  ;;  %v1498_v62 = vor.u32 %v1741_v57, %v1495_v58 }
  0x66   :  { %834 = vmatpush.bf16.msra.mxu0 %v1338_v3  ;;  %v1765_v3 = vld [vmem:[#allocation8 + $0x30] sm:$0xff] }
  0x67   :  { %872 = vmatpush.bf16.msrb.mxu2 %v1538_v63  ;;  %v1562_v63 = vor.u32 %v1757_v59, %v1559_v60 }
  0x68   :  { %860 = vmatpush.bf16.msra.mxu3 %v1466_v7 }
  0x69   :  { %847 = vmatpush.bf16.msra.mxu1 %v1402_v11 }
  0x6a   :  { %835 = vmatpush.bf16.msra.mxu0 %v1330_v13 }
  0x6b   :  { %873 = vmatpush.bf16.msrb.mxu2 %v1530_v56 }
  0x6c   :  { %861 = vmatpush.bf16.msra.mxu3 %v1458_v17  ;;  %v1774_v17 = vld [vmem:[#allocation8 + $0x78] sm:$0xff] }
  0x6d   :  { %848 = vmatpush.bf16.msra.mxu1 %v1394_v22  ;;  %v1773_v22 = vld [vmem:[#allocation8 + $0x70] sm:$0xff] }
  0x6e   :  { %836 = vmatpush.bf16.msra.mxu0 %v1322_v25 }
  0x6f   :  { %874 = vmatpush.bf16.msrb.mxu2 %v1522_v23 }
  0x70   :  { %862 = vmatpush.bf16.msra.mxu3 %v1450_v29  ;;  %v1771_v29 = vld [vmem:[#allocation8 + $0x60] sm:$0xff] }
  0x71   :  { %849 = vmatpush.bf16.msra.mxu1 %v1386_v35  ;;  %v1770_v35 = vld [vmem:[#allocation8 + $0x58] sm:$0xff] }
  0x72   :  { %837 = vmatpush.bf16.msra.mxu0 %v1314_v39 }
  0x73   :  { %875 = vmatpush.bf16.msrb.mxu2 %v1514_v36  ;;  %v1769_v36 = vld [vmem:[#allocation8 + $0x50] sm:$0xff] }
  0x74   :  { %863 = vmatpush.bf16.msra.mxu3 %v1442_v44 }
  0x75   :  { %850 = vmatpush.bf16.msra.mxu1 %v1378_v49 }
  0x76   :  { %838 = vmatpush.bf16.msra.mxu0 %v1306_v52 }
  0x77   :  { %876 = vmatpush.bf16.msrb.mxu2 %v1506_v50 }
  0x78   :  { %864 = vmatpush.bf16.msra.mxu3 %v1434_v55 }
  0x79   :  { %851 = vmatpush.bf16.msra.mxu1 %v1370_v61  ;;  %839 = vmatmul.bf16.vlgmr.msra.gmra.mxu0 %v2016_v51  ;;  %v1762_v51 = vld [vmem:[#allocation8 + $0x18] sm:$0xff] }
  0x7b   :  { %865 = vmatmul.bf16.vlgmr.msra.gmra.mxu3 %v2032_v30  ;;  %877 = vmatpush.bf16.msrb.mxu2 %v1498_v62  ;;  %v1761_v30 = vld [vmem:[#allocation8 + $0x10] sm:$0xff] }
  0x7c   :  { %852 = vmatmul.bf16.vlgmr.msra.gmra.mxu1 %v2020_v0  ;;  %1045 = vmatpush.bf16.msrb.mxu3 %v1774_v17 }
  0x7d   :  { %1032 = vmatpush.bf16.msrb.mxu1 %v1766_v2 }
  0x7e   :  { %878 = vmatmul.bf16.vlgmr.msrb.gmra.mxu2 %v2034_v37  ;;  %v1759_v37 = vld [vmem:[#allocation8] sm:$0xff] }
  0x7f   :  { %890 = vmatpush.bf16.msra.mxu2 %v1562_v63 }
  0x80   :  { %1046 = vmatpush.bf16.msrb.mxu3 %v1773_v22 }
  0x81   :  { %1033 = vmatpush.bf16.msrb.mxu1 %v1765_v3  ;;  %v1782_v3 = vld [vmem:[#allocation10 + $0x38] sm:$0xff] }
  0x82   :  { %1128 = vmatpush.bf16.msrb.mxu0 %v1782_v3 }
  0x84   :  { %1047 = vmatpush.bf16.msrb.mxu3 %v1772_v26 }
  0x85   :  { %1034 = vmatpush.bf16.msrb.mxu1 %v1764_v4  ;;  %v1781_v4 = vld [vmem:[#allocation10 + $0x30] sm:$0xff] }
  0x86   :  { %1129 = vmatpush.bf16.msrb.mxu0 %v1781_v4 }
  0x88   :  { %1048 = vmatpush.bf16.msrb.mxu3 %v1771_v29 }
  0x89   :  { %1035 = vmatpush.bf16.msrb.mxu1 %v1763_v5  ;;  %v1780_v5 = vld [vmem:[#allocation10 + $0x28] sm:$0xff] }
  0x8a   :  { %1130 = vmatpush.bf16.msrb.mxu0 %v1780_v5 }
  0x8c   :  { %1049 = vmatpush.bf16.msrb.mxu3 %v1770_v35 }
  0x8d   :  { %1036 = vmatpush.bf16.msrb.mxu1 %v1762_v51  ;;  %v1779_v51 = vld [vmem:[#allocation10 + $0x20] sm:$0xff] }
  0x8e   :  { %1564 = vmatmul.msk.bf16.vlgmr.msra.gmra.mxu2 %vm710_vm0, %v2028_v43  ;;  %v214_v43 = vld [vmem:[#allocation7] sm:$0x3]  ;;  %1131 = vmatpush.bf16.msrb.mxu0 %v1779_v51 }
  0x8f   :  { %v216_v11 = vperm.slane %v214_v43, 0  ;;  %v217_v45 = vperm.slane %v214_v43, 1  ;;  %v1793_v43 = vld [vmem:[%s2059_s4] ss:$0 sm:$0xff]  ;;  %s1960_s4 = smov [#allocation11]  }
  0x90   :  { %1050 = vmatpush.bf16.msrb.mxu3 %v1769_v36  ;;  %s1157_s29 = sshll.u32 %s1960_s4, 4  ;;  %s1158_s29 = int_to_ptr.vmem [resolvable:$true] %s1157_s29 }
  0x91   :  { %1037 = vmatpush.bf16.msrb.mxu1 %v1761_v30  ;;  %v1778_v30 = vld [vmem:[#allocation10 + $0x18] sm:$0xff] }
  0x92   :  { %1132 = vmatpush.bf16.msrb.mxu0 %v1778_v30 }
  0x94   :  { %1051 = vmatpush.bf16.msrb.mxu3 %v1768_v40 }
  0x95   :  { %1038 = vmatpush.bf16.msrb.mxu1 %v1760_v6  ;;  %v1777_v6 = vld [vmem:[#allocation10 + $0x10] sm:$0xff] }
  0x96   :  { %1133 = vmatpush.bf16.msrb.mxu0 %v1777_v6 }
  0x98   :  { %1052 = vmatpush.bf16.msrb.mxu3 %v1767_v41 }
  0x99   :  { %1039 = vmatpush.bf16.msrb.mxu1 %v1759_v37  ;;  %v1776_v37 = vld [vmem:[#allocation10 + $0x8] sm:$0xff] }
  0x9a   :  { %1134 = vmatpush.bf16.msrb.mxu0 %v1776_v37 }
  0xb6   :  { %v723_v7 = vpop.f32.mrf.mxu0 }
  0xb7   :  { %v724_v12 = vadd.f32 %v723_v7, %v216_v11 }
  0xb9   :  { %v736_v0 = vpop.f32.mrf.mxu1 }
  0xba   :  { %v737_v14 = vadd.f32 %v736_v0, %v724_v12 }
  0xbd   :  { %v749_v8 = vpop.f32.mrf.mxu2 }
  0xbe   :  { %v762_v1 = vpop.f32.mrf.mxu3  ;;  %v725_v9 = vpop.f32.mrf.mxu0  ;;  %v750_v16 = vadd.f32 %v749_v8, %v737_v14  ;;  %v1775_v8 = vld [vmem:[#allocation10] sm:$0xff] }
  0xbf   :  { %1135 = vmatpush.bf16.msrb.mxu0 %v1775_v8 }
  0xc0   :  { %v763_v18 = vadd.f32 %v762_v1, %v750_v16 }
  0xc1   :  { %v738_v10 = vpop.f32.mrf.mxu1 }
  0xc5   :  { %v751_v56 = vpop.f32.mrf.mxu2 }
  0xc6   :  { %v764_v13 = vpop.f32.mrf.mxu3 }
  0xc7   :  { %v1794_v13 = vld [vmem:[%s2061_s6] ss:$0 sm:$0xff] }
  0xcd   :  { %v801_v15 = vpop.f32.mrf.mxu2 }
  0xd5   :  { %v803_v21 = vpop.f32.mrf.mxu2 }
  0xd6   :  { %v775_v19 = vpop.f32.mrf.mxu0 }
  0xd7   :  { %v776_v20 = vadd.f32 %v775_v19, %v763_v18 }
  0xd9   :  { %v788_v23 = vpop.f32.mrf.mxu1 }
  0xda   :  { %v789_v24 = vadd.f32 %v788_v23, %v776_v20 }
  0xdc   :  { %v802_v25 = vadd.f32 %v801_v15, %v789_v24 }
  0xde   :  { %v896_v27 = vmax.f32 %v802_v25, 0.0  ;;  %v777_v28 = vpop.f32.mrf.mxu0  ;;  %v814_v33 = vpop.f32.mrf.mxu3 }
  0xdf   :  { %v815_v48 = vadd.f32 %v814_v33, %v217_v45 }
  0xe0   :  { %v898_v31 = vpack.c.bf16 %v896_v27, %v896_v27 }
  0xe1   :  { %v827_v32 = vpop.f32.mrf.mxu2  ;;  %v790_v34 = vpop.f32.mrf.mxu1 }
  0xe2   :  { %1040 = vmatmul.bf16.vlgmr.msrb.gmra.mxu1 %v898_v31  ;;  %v828_v52 = vadd.f32 %v827_v32, %v815_v48 }
  0xe6   :  { %v816_v39 = vpop.f32.mrf.mxu3 }
  0xe9   :  { %v829_v38 = vpop.f32.mrf.mxu2 }
  0xf6   :  { %v840_v42 = vpop.f32.mrf.mxu0 }
  0xf7   :  { %v841_v53 = vadd.f32 %v840_v42, %v828_v52 }
  0xf9   :  { %v853_v44 = vpop.f32.mrf.mxu1 }
  0xfa   :  { %v854_v57 = vadd.f32 %v853_v44, %v841_v53 }
  0xfe   :  { %v866_v46 = vpop.f32.mrf.mxu3  ;;  %v842_v47 = vpop.f32.mrf.mxu0 }
  0xff   :  { %v867_v58 = vadd.f32 %v866_v46, %v854_v57 }
 0x101   :  { %v879_v49 = vpop.f32.mrf.mxu2  ;;  %v855_v50 = vpop.f32.mrf.mxu1 }
 0x102   :  { %v880_v59 = vadd.f32 %v879_v49, %v867_v58 }
 0x106   :  { %v868_v54 = vpop.f32.mrf.mxu3 }
 0x109   :  { %v881_v55 = vpop.f32.mrf.mxu2 }
 0x111   :  { %v892_v60 = vpop.f32.mrf.mxu2 }
 0x112   :  { %v893_v61 = vadd.f32 %v892_v60, %v880_v59 }
 0x114   :  { %v897_v62 = vmax.f32 %v893_v61, 0.0 }
 0x116   :  { %v899_v63 = vpack.c.bf16 %v897_v62, %v897_v62 }
 0x118   :  { %1053 = vmatmul.bf16.vlgmr.msrb.gmra.mxu3 %v899_v63 }
 0x119   :  { %v894_v2 = vpop.f32.mrf.mxu2 }
 0x15f   :  { %v1041_v7 = vpop.f32.mrf.mxu1 }
 0x160   :  { %v1042_v1 = vadd.f32 %v1793_v43, %v1041_v7 }
 0x167   :  { %v1043_v0 = vpop.f32.mrf.mxu1 }
 0x19b   :  { %v1054_v9 = vpop.f32.mrf.mxu3 }
 0x19c   :  { %v1055_v10 = vadd.f32 %v1054_v9, %v1042_v1 }
 0x19e   :  { %v1058_v11 = vmax.f32 %v1055_v10, 0.0 }
 0x1a0   :  { %v1059_v56 = vpack.c.bf16 %v1058_v11, %v1058_v11 }
 0x1a2   :  { %1136 = vmatmul.bf16.vlgmr.msrb.gmra.mxu0 %v1059_v56 }
 0x1a3   :  { %v1056_v12 = vpop.f32.mrf.mxu3 }
 0x21f   :  { %v1137_v14 = vpop.f32.mrf.mxu0 }
 0x220   :  { %v1138_v15 = vadd.f32 %v1794_v13, %v1137_v14 }
 0x222   :  { %1141 = vmax.xlane.f32.xlu0 %v1138_v15 }
 0x227   :  { %v1139_v16 = vpop.f32.mrf.mxu0 }
 0x295   :  { %v1142_v17 = vpop.xlane.xlu0 %1141 }
 0x296   :  { %v1143_v18 = vsub.f32 %v1138_v15, %v1142_v17 }
 0x298   :  { %v1144_v19 = vmul.f32 1.442695, %v1143_v18 }
 0x29a   :  { %1795 = vpow2.f32 %v1144_v19 }
 0x2a0   :  { %v1796_v20 = vpop.eup %1795 }
 0x2a1   :  { %1146 = vadd.xlane.f32.xlu0 %v1796_v20 }
 0x314   :  { %v1147_v21 = vpop.xlane.xlu0 %1146 }
 0x315   :  { %1797 = vrcp.f32 %v1147_v21 }
 0x31b   :  { %v1798_v22 = vpop.eup %1797 }
 0x31c   :  { %v1149_v23 = vmul.f32 %v1798_v22, %v1796_v20 }
 0x31e   :  { %v1150_v24 = vpack.c.bf16 %v1149_v23, %v1149_v23 }
 0x320   :  { %1151 = vst [vmem:[#allocation11] sm:$0xf] %v1150_v24 }
 0x321   :  { %1162 = dma.vmem_to_hbm [thread:$0]  %s1158_s29, 64, %s1160_s9, [#allocation4]  }
 0x322   :  { %1949 = dma.done.wait [#allocation4], 64  }
 0x323   :  { %1950 = vsyncadd [#allocation4], 4294967232 }
 0x324   :  { %1167 = vsyncpa [#allocation3], 1 }
 0x325   :  { %1168 = vsyncpa [#allocation6], 1 }
 0x326   :  { %1169 = vsyncpa [#allocation9], 1 }
 0x327   :  { %1170 = vsyncpa [#allocation4], 1 }

</bundles_post_ra>
